<compile_context>
chip_gen: v7x
topology: tpu7x:2x2x1
jax: 0.10.0
libtpu: 0.0.40
codegen_flags: <defaults>
</compile_context>

<pallas_src>
import functools

import jax
import jax.numpy as jnp
from jax import lax
from jax.experimental import pallas as pl
from jax.experimental.pallas import tpu as pltpu


def _round_up(n, m):
    return ((n + m - 1) // m) * m


def _pad_to(a, shape):
    pads = [(0, s - d) for d, s in zip(a.shape, shape)]
    if all(p == (0, 0) for p in pads):
        return a
    return jnp.pad(a, pads)


def _block_seq_kernel(x_ref, w_ref, b_ref, v0_ref, s0_ref,
                      spikes_seq_ref, v_out_ref, s_out_ref,
                      *, threshold, decay, hard_reset, T_total, matmul_dtype):
    """One (batch-tile, timestep-chunk) grid point.

    x_ref:          (Tt, bm, in_fp)   activations for this chunk / tile
    w_ref:          (out_fp, in_fp)   whole weight (PyTorch layout), resident
    b_ref:          (1, out_fp)       bias row, resident
    v0_ref/s0_ref:  (bm, out_fp)      initial LIF state (read only at t-chunk 0)
    spikes_seq_ref: (Tt, bm, out_fp)  per-timestep spike output
    v_out_ref/s_out_ref: (bm, out_fp) final LIF state; also CARRIES the state
                                      across t-chunks (block index constant in t)
    """
    tc = pl.program_id(1)
    Tt, bm, in_fp = x_ref.shape
    out_fp = w_ref.shape[0]

    # Initialize the resident state buffers at the first timestep chunk.
    @pl.when(tc == 0)
    def _():
        v_out_ref[...] = v0_ref[...]
        s_out_ref[...] = s0_ref[...].astype(s_out_ref.dtype)

    # deltaV has no temporal dependence: one matmul covers the whole chunk.
    # Contract against the un-transposed weight (PyTorch [out_f, in_f] layout),
    # f32 accumulation regardless of matmul_dtype.
    x = x_ref[...].reshape(Tt * bm, in_fp).astype(matmul_dtype)
    deltaV = lax.dot_general(
        x, w_ref[...],
        dimension_numbers=(((1,), (1,)), ((), ())),
        preferred_element_type=jnp.float32) + b_ref[...]
    deltaV = deltaV.reshape(Tt, bm, out_fp)

    # Serial LIF membrane recurrence over the chunk (cheap VPU work, f32).
    v = v_out_ref[...]
    s = s_out_ref[...].astype(jnp.float32)
    rem = T_total % Tt
    for i in range(Tt):                       # static unroll, concrete indices
        if hard_reset:
            v_upd = v * (1.0 - s) * decay + deltaV[i]
        else:
            v_upd = (v - s * threshold) * decay + deltaV[i]
        spk = (v_upd - threshold > 0.0).astype(jnp.float32)
        spikes_seq_ref[i] = spk.astype(spikes_seq_ref.dtype)
        if rem != 0 and i >= rem:
            # This step may be T-padding in the last chunk: freeze the state.
            valid = tc * Tt + i < T_total
            v = jnp.where(valid, v_upd, v)
            s = jnp.where(valid, spk, s)
        else:
            v, s = v_upd, spk
    v_out_ref[...] = v
    s_out_ref[...] = s.astype(s_out_ref.dtype)


def block_forward_seq(x_seq, weight, bias, v_prev, spikes_prev, *,
                      threshold=1.0, decay=1.0, hard_reset=True,
                      bm=128, Tt=8, target_batch_tiles=1,
                      matmul_dtype=jnp.float32, spike_dtype=jnp.float32):
    """Fused T-step Block/LIF recurrence.

    x_seq:  [T, B, in_f] f32
    weight: [out_f, in_f] (PyTorch nn.Linear layout), bias: [out_f]
    v_prev, spikes_prev: [B, out_f] initial LIF state.
    Returns (spikes_seq [T, B, out_f], v_final [B, out_f], spikes_final [B, out_f]).

    Tuning: bm=256 on v6e/v7x (256-wide MXU) once the weight is bf16;
    target_batch_tiles=2 on v7x (2 TensorCores); matmul_dtype=bf16 and
    spike_dtype=bf16 on v6e/v7x.  All defaults are exact-f32 / v5e-safe.
    """
    T, B, in_f = x_seq.shape
    out_f, in_f_w = weight.shape
    assert in_f_w == in_f

    # Batch tile (MXU rows): clamp for tiny batches, round B up cdiv-style.
    bm = min(bm, _round_up(B, 8))
    B_p = _round_up(B, bm)
    # Optionally guarantee >= target_batch_tiles tiles on the "parallel" axis
    # (v7x: 2 TensorCores share the grid's parallel dims).
    while B_p // bm < target_batch_tiles and bm >= 16 and bm % 16 == 0:
        bm //= 2
        B_p = _round_up(B, bm)

    # Timestep chunk size; T is rounded up and padded steps are masked inside
    # the kernel so the carried state stays exact.
    Tt = max(1, min(Tt, T))
    T_p = _round_up(T, Tt)

    # Lane-dense padding on BOTH feature axes: out_f -> un-masked vst stores,
    # in_f -> lane-dense x/W loads (no relayout before the MXU). Zero-padded
    # contraction columns contribute nothing.
    out_fp = _round_up(out_f, 128)
    in_fp = _round_up(in_f, 128)

    x_p = _pad_to(x_seq.astype(jnp.float32), (T_p, B_p, in_fp))
    # Weight cast ONCE here (not per grid step); bf16 halves its resident
    # VMEM footprint and HBM DMA and feeds v6e/v7x MXUs at native bf16 rate.
    w_p = _pad_to(weight.astype(jnp.float32), (out_fp, in_fp)).astype(matmul_dtype)
    b_p = _pad_to(bias.astype(jnp.float32).reshape(1, out_f), (1, out_fp))
    v_p = _pad_to(v_prev.astype(jnp.float32), (B_p, out_fp))
    s_p = _pad_to(spikes_prev.astype(jnp.float32), (B_p, out_fp))

    kernel = functools.partial(
        _block_seq_kernel, threshold=float(threshold), decay=float(decay),
        hard_reset=bool(hard_reset), T_total=T, matmul_dtype=matmul_dtype)

    # Constant-index blocks: double buffering them is pure VMEM waste.
    resident = pl.Buffered(1)

    grid_spec = pltpu.PrefetchScalarGridSpec(
        num_scalar_prefetch=0,
        grid=(B_p // bm, T_p // Tt),
        in_specs=[
            pl.BlockSpec((Tt, bm, in_fp), lambda b, t: (t, b, 0)),    # x chunk
            pl.BlockSpec((out_fp, in_fp), lambda b, t: (0, 0),
                         pipeline_mode=resident),                     # W (resident)
            pl.BlockSpec((1, out_fp), lambda b, t: (0, 0),
                         pipeline_mode=resident),                     # bias (resident)
            pl.BlockSpec((bm, out_fp), lambda b, t: (b, 0)),          # v0 tile
            pl.BlockSpec((bm, out_fp), lambda b, t: (b, 0)),          # s0 tile
        ],
        out_specs=[
            pl.BlockSpec((Tt, bm, out_fp), lambda b, t: (t, b, 0)),   # spikes/chunk
            pl.BlockSpec((bm, out_fp), lambda b, t: (b, 0)),          # final v (carries state)
            pl.BlockSpec((bm, out_fp), lambda b, t: (b, 0)),          # final spikes (carries state)
        ],
    )

    # VMEM budget derived from the actual tiles (v7x has 64 MiB physical).
    mm_bytes = jnp.dtype(matmul_dtype).itemsize
    spk_bytes = jnp.dtype(spike_dtype).itemsize
    vmem_est = (2 * Tt * bm * in_fp * 4                 # x (double buffered)
                + out_fp * in_fp * mm_bytes             # W (single buffered)
                + out_fp * 4                            # bias
                + 2 * 2 * bm * out_fp * 4               # v0 / s0 (double buffered)
                + 2 * Tt * bm * out_fp * spk_bytes      # spikes_seq (double buffered)
                + bm * out_fp * (4 + spk_bytes))        # resident v / spike state
    vmem_limit = int(min(96 * 2**20, max(32 * 2**20, 2 * vmem_est)))

    # TODO(synk): for very large out_features add a third "parallel" grid axis
    # tiling out_f (the LIF update is elementwise across features) so the
    # resident weight tile fits v7x's 64 MiB VMEM without shrinking bm/Tt.
    spikes_seq, v_fin, s_fin = pl.pallas_call(
        kernel,
        out_shape=(
            jax.ShapeDtypeStruct((T_p, B_p, out_fp), spike_dtype),
            jax.ShapeDtypeStruct((B_p, out_fp), jnp.float32),
            jax.ShapeDtypeStruct((B_p, out_fp), spike_dtype),
        ),
        grid_spec=grid_spec,
        compiler_params=pltpu.CompilerParams(
            dimension_semantics=("parallel", "arbitrary"),
            vmem_limit_bytes=vmem_limit),
    )(x_p, w_p, b_p, v_p, s_p)

    # NOTE: padded rows/cols of v_fin/s_fin are sliced off here and must not
    # be fed back into a padded next call without re-zeroing.
    return (spikes_seq[:T, :B, :out_f],
            v_fin[:B, :out_f],
            s_fin[:B, :out_f])


def block_forward(x, weight, bias, v_prev, spikes_prev, *,
                  threshold=1.0, decay=1.0, hard_reset=True, bm=128,
                  matmul_dtype=jnp.float32, spike_dtype=jnp.float32):
    """Single Block.forward call (one LIF timestep). Returns (spikes, v_new)."""
    spikes_seq, v_new, _ = block_forward_seq(
        x[None], weight, bias, v_prev, spikes_prev,
        threshold=threshold, decay=decay, hard_reset=hard_reset, bm=bm, Tt=1,
        matmul_dtype=matmul_dtype, spike_dtype=spike_dtype)
    return spikes_seq[0], v_new


# ----------------------------- pure-JAX reference -----------------------------

def reference_step(x, weight, bias, v_prev, spikes_prev, *, threshold, decay):
    deltaV = x @ weight.T + bias
    v = v_prev * (1.0 - spikes_prev) * decay + deltaV
    return (v - threshold > 0.0).astype(jnp.float32), v


def reference_seq(x_seq, weight, bias, v0, s0, *, threshold, decay):
    def step(carry, x):
        v, s = carry
        s_new, v_new = reference_step(x, weight, bias, v, s,
                                      threshold=threshold, decay=decay)
        return (v_new, s_new), s_new
    (v_fin, s_fin), spikes = lax.scan(step, (v0, s0), x_seq)
    return spikes, v_fin, s_fin


if __name__ == "__main__":
    # Small shapes consistent with Block(in_features, out_features, n_class)
    B, in_features, out_features = 8, 32, 16
    T = 4
    threshold, decay = 1.0, 1.0

    key = jax.random.PRNGKey(0)
    kx, kw, kb = jax.random.split(key, 3)

    x_seq = jax.random.normal(kx, (T, B, in_features), dtype=jnp.float32)
    bound = 1.0 / (in_features ** 0.5)
    weight = jax.random.uniform(kw, (out_features, in_features),
                                minval=-bound, maxval=bound, dtype=jnp.float32)
    bias = jax.random.uniform(kb, (out_features,),
                              minval=-bound, maxval=bound, dtype=jnp.float32)

    # First LIF call: zero membrane potential and zero previous spikes
    v0 = jnp.zeros((B, out_features), jnp.float32)
    s0 = jnp.zeros((B, out_features), jnp.float32)

    # --- single Block.forward (one timestep), matches the original module ---
    spikes, v1 = block_forward(x_seq[0], weight, bias, v0, s0,
                               threshold=threshold, decay=decay)
    jax.block_until_ready((spikes, v1))
    ref_spikes, ref_v = reference_step(x_seq[0], weight, bias, v0, s0,
                                       threshold=threshold, decay=decay)
    assert jnp.allclose(v1, ref_v, atol=1e-5, rtol=1e-5)
    assert jnp.array_equal(spikes, ref_spikes)

    ref_spk_seq, ref_vf, ref_sf = reference_seq(x_seq, weight, bias, v0, s0,
                                                threshold=threshold, decay=decay)

    # --- fused T-step recurrence; Tt=3 forces T-padding (T=4 -> T_p=6) so the
    #     in-kernel padded-timestep mask path is exercised ---
    spikes_seq, v_fin, s_fin = block_forward_seq(
        x_seq, weight, bias, v0, s0, threshold=threshold, decay=decay, Tt=3)
    jax.block_until_ready((spikes_seq, v_fin, s_fin))
    assert jnp.allclose(v_fin, ref_vf, atol=1e-5, rtol=1e-5)
    assert jnp.array_equal(spikes_seq, ref_spk_seq)
    assert jnp.array_equal(s_fin, ref_sf)

    # --- default chunking (Tt clamps to T -> single chunk, one matmul) ---
    spikes_seq2, v_fin2, s_fin2 = block_forward_seq(
        x_seq, weight, bias, v0, s0, threshold=threshold, decay=decay)
    jax.block_until_ready((spikes_seq2, v_fin2, s_fin2))
    assert jnp.array_equal(spikes_seq2, ref_spk_seq)
    assert jnp.allclose(v_fin2, ref_vf, atol=1e-5, rtol=1e-5)
    assert jnp.array_equal(s_fin2, ref_sf)

    # --- v6e/v7x fast path: bf16 weight/matmul + bf16 spike storage.
    #     Spikes near threshold can legitimately flip vs the f32 reference,
    #     so only sanity-check this configuration. ---
    spikes_bf, v_bf, s_bf = block_forward_seq(
        x_seq, weight, bias, v0, s0, threshold=threshold, decay=decay,
        matmul_dtype=jnp.bfloat16, spike_dtype=jnp.bfloat16)
    jax.block_until_ready((spikes_bf, v_bf, s_bf))
    assert spikes_bf.shape == (T, B, out_features)
    spk_f32 = spikes_bf.astype(jnp.float32)
    assert bool(jnp.all((spk_f32 == 0.0) | (spk_f32 == 1.0)))
    assert bool(jnp.all(jnp.isfinite(v_bf)))

    print("KERNEL_OK")
</pallas_src>

<mosaic_0001>
module attributes {stable_mosaic.version = 11 : i64} {
  func.func @_block_seq_kernel(%arg0: i32, %arg1: i32, %arg2: memref<1x8x128xf32, #tpu.memory_space<vmem>>, %arg3: memref<128x128xf32, #tpu.memory_space<vmem>>, %arg4: memref<1x128xf32, #tpu.memory_space<vmem>>, %arg5: memref<8x128xf32, #tpu.memory_space<vmem>>, %arg6: memref<8x128xf32, #tpu.memory_space<vmem>>, %arg7: memref<1x8x128xf32, #tpu.memory_space<vmem>>, %arg8: memref<8x128xf32, #tpu.memory_space<vmem>>, %arg9: memref<8x128xf32, #tpu.memory_space<vmem>>) attributes {dimension_semantics = [#tpu.dimension_semantics<parallel>, #tpu.dimension_semantics<arbitrary>], iteration_bounds = array<i64: 1, 1>, scalar_prefetch = 0 : i64, scratch_operands = 0 : i64, tpu.core_type = #tpu.core_type<tc>, window_params = [{transform_indices = @transform_0, window_bounds = array<i64: 1, 8, 128>}, {pipeline_mode = #tpu.pipeline_mode<synchronous>, transform_indices = @transform_1, window_bounds = array<i64: 128, 128>}, {pipeline_mode = #tpu.pipeline_mode<synchronous>, transform_indices = @transform_2, window_bounds = array<i64: 1, 128>}, {transform_indices = @transform_3, window_bounds = array<i64: 8, 128>}, {transform_indices = @transform_4, window_bounds = array<i64: 8, 128>}, {transform_indices = @transform_5, window_bounds = array<i64: 1, 8, 128>}, {transform_indices = @transform_6, window_bounds = array<i64: 8, 128>}, {transform_indices = @transform_7, window_bounds = array<i64: 8, 128>}]} {
    %c0_i32 = arith.constant 0 : i32
    %0 = arith.cmpi eq, %arg1, %c0_i32 : i32
    %1 = arith.extui %0 : i1 to i32
    %c0_i32_0 = arith.constant 0 : i32
    %2 = arith.cmpi ne, %1, %c0_i32_0 : i32
    scf.if %2 {
      %c0_22 = arith.constant 0 : index
      %c0_23 = arith.constant 0 : index
      %31 = vector.load %arg5[%c0_22, %c0_23] : memref<8x128xf32, #tpu.memory_space<vmem>>, vector<8x128xf32>
      %c0_24 = arith.constant 0 : index
      %c0_25 = arith.constant 0 : index
      %32 = vector.load %arg8[%c0_24, %c0_25] : memref<8x128xf32, #tpu.memory_space<vmem>>, vector<8x128xf32>
      tpu.vector_store %arg8[%c0_24, %c0_25], %31 {strides = array<i32>} : memref<8x128xf32, #tpu.memory_space<vmem>>, vector<8x128xf32>,
      %c0_26 = arith.constant 0 : index
      %c0_27 = arith.constant 0 : index
      %33 = vector.load %arg6[%c0_26, %c0_27] : memref<8x128xf32, #tpu.memory_space<vmem>>, vector<8x128xf32>
      %c0_28 = arith.constant 0 : index
      %c0_29 = arith.constant 0 : index
      %34 = vector.load %arg9[%c0_28, %c0_29] : memref<8x128xf32, #tpu.memory_space<vmem>>, vector<8x128xf32>
      tpu.vector_store %arg9[%c0_28, %c0_29], %33 {strides = array<i32>} : memref<8x128xf32, #tpu.memory_space<vmem>>, vector<8x128xf32>,
    } else {
    }
    %c0 = arith.constant 0 : index
    %c0_1 = arith.constant 0 : index
    %c0_2 = arith.constant 0 : index
    %3 = vector.load %arg2[%c0, %c0_1, %c0_2] : memref<1x8x128xf32, #tpu.memory_space<vmem>>, vector<1x8x128xf32>
    %4 = vector.shape_cast %3 : vector<1x8x128xf32> to vector<8x128xf32>
    %c0_3 = arith.constant 0 : index
    %c0_4 = arith.constant 0 : index
    %5 = vector.load %arg3[%c0_3, %c0_4] : memref<128x128xf32, #tpu.memory_space<vmem>>, vector<128x128xf32>
    %cst = arith.constant dense<0.000000e+00> : vector<8x128xf32>
    %6 = tpu.matmul %4, %5, %cst {dimension_numbers = #tpu.dot_dimension_numbers<[1], [1], [0], [0], [0, 0, 1, 0], [], []>} : vector<8x128xf32>, vector<128x128xf32>, vector<8x128xf32> -> vector<8x128xf32>
    %c0_5 = arith.constant 0 : index
    %c0_6 = arith.constant 0 : index
    %7 = vector.load %arg4[%c0_5, %c0_6] : memref<1x128xf32, #tpu.memory_space<vmem>>, vector<1x128xf32>
    %8 = vector.broadcast %7 : vector<1x128xf32> to vector<8x128xf32>
    %9 = arith.addf %6, %8 : vector<8x128xf32>
    %10 = vector.shape_cast %9 : vector<8x128xf32> to vector<1x8x128xf32>
    %c0_7 = arith.constant 0 : index
    %c0_8 = arith.constant 0 : index
    %11 = vector.load %arg8[%c0_7, %c0_8] : memref<8x128xf32, #tpu.memory_space<vmem>>, vector<8x128xf32>
    %c0_9 = arith.constant 0 : index
    %c0_10 = arith.constant 0 : index
    %12 = vector.load %arg9[%c0_9, %c0_10] : memref<8x128xf32, #tpu.memory_space<vmem>>, vector<8x128xf32>
    %cst_11 = arith.constant 1.000000e+00 : f32
    %13 = vector.broadcast %cst_11 : f32 to vector<8x128xf32>
    %14 = arith.subf %13, %12 : vector<8x128xf32>
    %15 = arith.mulf %11, %14 : vector<8x128xf32>
    %cst_12 = arith.constant 1.000000e+00 : f32
    %16 = vector.broadcast %cst_12 : f32 to vector<8x128xf32>
    %17 = arith.mulf %15, %16 : vector<8x128xf32>
    %18 = vector.shape_cast %10 : vector<1x8x128xf32> to vector<8x128xf32>
    %19 = arith.addf %17, %18 : vector<8x128xf32>
    %cst_13 = arith.constant 1.000000e+00 : f32
    %20 = vector.broadcast %cst_13 : f32 to vector<8x128xf32>
    %21 = arith.subf %19, %20 : vector<8x128xf32>
    %cst_14 = arith.constant 0.000000e+00 : f32
    %22 = vector.broadcast %cst_14 : f32 to vector<8x128xf32>
    %23 = arith.cmpf ogt, %21, %22 : vector<8x128xf32>
    %24 = arith.extui %23 : vector<8x128xi1> to vector<8x128xi32>
    %25 = arith.sitofp %24 : vector<8x128xi32> to vector<8x128xf32>
    %c0_15 = arith.constant 0 : index
    %c0_16 = arith.constant 0 : index
    %c0_17 = arith.constant 0 : index
    %26 = vector.load %arg7[%c0_15, %c0_16, %c0_17] : memref<1x8x128xf32, #tpu.memory_space<vmem>>, vector<1x8x128xf32>
    %27 = vector.shape_cast %26 : vector<1x8x128xf32> to vector<8x128xf32>
    %28 = vector.shape_cast %25 : vector<8x128xf32> to vector<1x8x128xf32>
    tpu.vector_store %arg7[%c0_15, %c0_16, %c0_17], %28 {strides = array<i32>} : memref<1x8x128xf32, #tpu.memory_space<vmem>>, vector<1x8x128xf32>,
    %c0_18 = arith.constant 0 : index
    %c0_19 = arith.constant 0 : index
    %29 = vector.load %arg8[%c0_18, %c0_19] : memref<8x128xf32, #tpu.memory_space<vmem>>, vector<8x128xf32>
    tpu.vector_store %arg8[%c0_18, %c0_19], %19 {strides = array<i32>} : memref<8x128xf32, #tpu.memory_space<vmem>>, vector<8x128xf32>,
    %c0_20 = arith.constant 0 : index
    %c0_21 = arith.constant 0 : index
    %30 = vector.load %arg9[%c0_20, %c0_21] : memref<8x128xf32, #tpu.memory_space<vmem>>, vector<8x128xf32>
    tpu.vector_store %arg9[%c0_20, %c0_21], %25 {strides = array<i32>} : memref<8x128xf32, #tpu.memory_space<vmem>>, vector<8x128xf32>,
    return
  }
  func.func @transform_0(%arg0: i32, %arg1: i32) -> (i32, i32, i32) {
    %c0_i32 = arith.constant 0 : i32
    %c0_i32_0 = arith.constant 0 : i32
    return %arg1, %arg0, %c0_i32 : i32, i32, i32
  }
  func.func @transform_1(%arg0: i32, %arg1: i32) -> (i32, i32) {
    %c0_i32 = arith.constant 0 : i32
    %c0_i32_0 = arith.constant 0 : i32
    %c0_i32_1 = arith.constant 0 : i32
    return %c0_i32, %c0_i32_0 : i32, i32
  }
  func.func @transform_2(%arg0: i32, %arg1: i32) -> (i32, i32) {
    %c0_i32 = arith.constant 0 : i32
    %c0_i32_0 = arith.constant 0 : i32
    %c0_i32_1 = arith.constant 0 : i32
    return %c0_i32, %c0_i32_0 : i32, i32
  }
  func.func @transform_3(%arg0: i32, %arg1: i32) -> (i32, i32) {
    %c0_i32 = arith.constant 0 : i32
    %c0_i32_0 = arith.constant 0 : i32
    return %arg0, %c0_i32 : i32, i32
  }
  func.func @transform_4(%arg0: i32, %arg1: i32) -> (i32, i32) {
    %c0_i32 = arith.constant 0 : i32
    %c0_i32_0 = arith.constant 0 : i32
    return %arg0, %c0_i32 : i32, i32
  }
  func.func @transform_5(%arg0: i32, %arg1: i32) -> (i32, i32, i32) {
    %c0_i32 = arith.constant 0 : i32
    %c0_i32_0 = arith.constant 0 : i32
    return %arg1, %arg0, %c0_i32 : i32, i32, i32
  }
  func.func @transform_6(%arg0: i32, %arg1: i32) -> (i32, i32) {
    %c0_i32 = arith.constant 0 : i32
    %c0_i32_0 = arith.constant 0 : i32
    return %arg0, %c0_i32 : i32, i32
  }
  func.func @transform_7(%arg0: i32, %arg1: i32) -> (i32, i32) {
    %c0_i32 = arith.constant 0 : i32
    %c0_i32_0 = arith.constant 0 : i32
    return %arg0, %c0_i32 : i32, i32
  }
}

</mosaic_0001>

<bundles_post_ra>
// kernel: tpu_custom_call.1
= control target key start
LH: loop header
LB: loop body
LE: loop exit
PB: predicated region body
PF: predicated region fallthrough
CT: control target
= control target key end

     0   :  { %13 = vsyncpa [#allocation3], 0  ;;  %s580_s0 = inlined_call_operand.hbm [shape: f32[1,8,128], index: 0, kind: input, shape index: {}]   ;;  %s581_s1 = inlined_call_operand.hbm [shape: f32[128,128], index: 1, kind: input, shape index: {}]   ;;  %s582_s2 = inlined_call_operand.vmem [shape: f32[1,128], index: 2, kind: input, shape index: {}]   ;;  %s583_s3 = inlined_call_operand.vmem [shape: f32[8,128], index: 3, kind: input, shape index: {}]   ;;  %s584_s4 = inlined_call_operand.hbm [shape: f32[8,128], index: 4, kind: input, shape index: {}]   ;;  %s585_s5 = inlined_call_operand.hbm [shape: f32[1,8,128], index: 5, kind: output, shape index: {0}]   ;;  %s586_s6 = inlined_call_operand.hbm [shape: f32[8,128], index: 6, kind: output, shape index: {1}]   ;;  %s587_s7 = inlined_call_operand.hbm [shape: f32[8,128], index: 7, kind: output, shape index: {2}]  }
   0x1   :  { %14 = vsyncpa [#allocation6], 0 }
   0x2   :  { %15 = vsyncpa [#allocation4], 0 }
   0x3   :  { %16 = vsyncpa [#allocation10], 0  ;;  %s449_s24 = smov [#allocation5]   ;;  %s309_s28 = scalar_lea.hbm %s581_s1, 2048 }
   0x4   :  { %s32_s25 = sshll.u32 %s449_s24, 4  ;;  %p310_p0 = scmp.ne.s32.totalorder %s581_s1, %s309_s28  ;;  %s33_s25 = int_to_ptr.vmem [resolvable:$true] %s32_s25 }
   0x5   :  { %p313_p1 = scmp.lt.u32.totalorder %s309_s28, %s581_s1 }
   0x7   :  { %p315_p2 = pnand %p313_p1, %p310_p0 }
   0x9   :  { %318 = shalt.err (!%p315_p2)
}
   0xa   :  { %s319_s10 = scalar_lea.vmem %s33_s25, 2048  ;;  %p324_p4 = scmp.lt.s32.totalorder %s33_s25, %s33_s25 }
   0xb   :  { %p320_p3 = scmp.ne.s32.totalorder %s33_s25, %s319_s10  ;;  %p325_p5 = scmp.lt.s32.totalorder %s319_s10, %s319_s10 }
   0xd   :  { %p326_p6 = por %p325_p5, %p324_p4 }
   0xf   :  { %p327_p7 = pnand %p326_p6, %p320_p3 }
  0x11   :  { %330 = shalt.err (!%p327_p7)
}
  0x12   :  { %s450_s11 = smov 128   ;;  %s451_s12 = smov 8  }
  0x13   :  { %38 = dma.hbm_to_vmem [thread:$0]  %s581_s1, 2048, %s33_s25, [#allocation6], %s450_s11, %s450_s11, %s451_s12  }
  0x14   :  { %s452_s15 = smov [#allocation2]   ;;  %s453_s17 = smov [#allocation7]  }
  0x15   :  { %s23_s16 = sshll.u32 %s452_s15, 4  ;;  %s49_s18 = sshll.u32 %s453_s17, 4  ;;  %s24_s16 = int_to_ptr.vmem [resolvable:$true] %s23_s16  ;;  %s50_s18 = int_to_ptr.vmem [resolvable:$true] %s49_s18 }
  0x16   :  { %s331_s21 = scalar_lea.hbm %s580_s0, 128 }
  0x17   :  { %p332_p8 = scmp.ne.s32.totalorder %s580_s0, %s331_s21  ;;  %p335_p9 = scmp.lt.u32.totalorder %s331_s21, %s580_s0 }
  0x19   :  { %p337_p10 = pnand %p335_p9, %p332_p8 }
  0x1b   :  { %340 = shalt.err (!%p337_p10)
}
  0x1c   :  { %s341_s1 = scalar_lea.vmem %s24_s16, 128  ;;  %p346_p12 = scmp.lt.s32.totalorder %s24_s16, %s24_s16 }
  0x1d   :  { %p342_p11 = scmp.ne.s32.totalorder %s24_s16, %s341_s1  ;;  %p347_p13 = scmp.lt.s32.totalorder %s341_s1, %s341_s1 }
  0x1f   :  { %p348_p0 = por %p347_p13, %p346_p12 }
  0x21   :  { %p349_p1 = pnand %p348_p0, %p342_p11 }
  0x23   :  { %352 = shalt.err (!%p349_p1)
}
  0x24   :  { %26 = dma.hbm_to_vmem [thread:$0]  %s580_s0, 128, %s24_s16, [#allocation3]  }
  0x25   :  { %s353_s30 = scalar_lea.hbm %s584_s4, 128 }
  0x26   :  { %p354_p2 = scmp.ne.s32.totalorder %s584_s4, %s353_s30  ;;  %p357_p3 = scmp.lt.u32.totalorder %s353_s30, %s584_s4 }
  0x28   :  { %p359_p4 = pnand %p357_p3, %p354_p2 }
  0x2a   :  { %362 = shalt.err (!%p359_p4)
}
  0x2b   :  { %s363_s12 = scalar_lea.vmem %s50_s18, 128  ;;  %p368_p6 = scmp.lt.s32.totalorder %s50_s18, %s50_s18 }
  0x2c   :  { %p364_p5 = scmp.ne.s32.totalorder %s50_s18, %s363_s12  ;;  %p369_p7 = scmp.lt.s32.totalorder %s363_s12, %s363_s12 }
  0x2e   :  { %p370_p8 = por %p369_p7, %p368_p6 }
  0x30   :  { %p371_p9 = pnand %p370_p8, %p364_p5 }
  0x32   :  { %374 = shalt.err (!%p371_p9)
}
  0x33   :  { %52 = dma.hbm_to_vmem [thread:$0]  %s584_s4, 128, %s50_s18, [#allocation6]  }
  0x34   :  { %441 = dma.done.wait [#allocation3], 128  }
  0x35   :  { %442 = vsyncadd [#allocation3], 4294967168 }
  0x36   :  { %443 = dma.done.wait [#allocation6], 2176  }
  0x37   :  { %444 = vsyncadd [#allocation6], 4294965120  ;;  %v454_v0 = vmov 0.0|0.0   ;;  %vm455_vm0 = vmmov 0   ;;  %v456_v1 = vmov 0.0   ;;  %v71_v2 = vld [vmem:[#allocation5] sm:$0xff] }
  0x38   :  { %274 = vmatprep.subr.bf16.mxu0 %v454_v0  ;;  %271 = vmatprep.mubr.msk.f32.mxu0 %vm455_vm0, %v456_v1  ;;  %v72_v3 = vld [vmem:[#allocation5 + $0x8] sm:$0xff]  ;;  %v73_v5 = vld [vmem:[#allocation5 + $0x10] sm:$0xff]  ;;  %v74_v6 = vld [vmem:[#allocation5 + $0x18] sm:$0xff]  ;;  %s457_s17 = smov [#allocation9]   ;;  %s458_s19 = smov [#allocation8]  }
  0x39   :  { %v275_v4 = vpack.c.bf16 %v72_v3, %v71_v2  ;;  %v278_v7 = vpack.c.bf16 %v74_v6, %v73_v5  ;;  %v75_v8 = vld [vmem:[#allocation5 + $0x20] sm:$0xff]  ;;  %v76_v9 = vld [vmem:[#allocation5 + $0x28] sm:$0xff]  ;;  %v77_v11 = vld [vmem:[#allocation5 + $0x30] sm:$0xff]  ;;  %s192_s18 = sshll.u32 %s457_s17, 4  ;;  %s182_s20 = sshll.u32 %s458_s19, 4  ;;  %s193_s18 = int_to_ptr.vmem [resolvable:$true] %s192_s18  ;;  %s183_s20 = int_to_ptr.vmem [resolvable:$true] %s182_s20 }
  0x3a   :  { %v281_v10 = vpack.c.bf16 %v76_v9, %v75_v8  ;;  %v78_v12 = vld [vmem:[#allocation5 + $0x38] sm:$0xff]  ;;  %v79_v14 = vld [vmem:[#allocation5 + $0x40] sm:$0xff]  ;;  %v80_v15 = vld [vmem:[#allocation5 + $0x48] sm:$0xff]  ;;  %s459_s21 = smov [#allocation11]   ;;  %s375_s23 = scalar_lea.vmem %s193_s18, 128 }
  0x3b   :  { %276 = vmatpush3.bf16.xpose.msra.mxu0 %v275_v4  ;;  %v284_v13 = vpack.c.bf16 %v78_v12, %v77_v11  ;;  %v287_v16 = vpack.c.bf16 %v80_v15, %v79_v14  ;;  %v81_v17 = vld [vmem:[#allocation5 + $0x50] sm:$0xff]  ;;  %v82_v18 = vld [vmem:[#allocation5 + $0x58] sm:$0xff]  ;;  %v83_v20 = vld [vmem:[#allocation5 + $0x60] sm:$0xff]  ;;  %s202_s22 = sshll.u32 %s459_s21, 4  ;;  %p376_p10 = scmp.ne.s32.totalorder %s193_s18, %s375_s23  ;;  %s203_s22 = int_to_ptr.vmem [resolvable:$true] %s202_s22 }
  0x3c   :  { %277 = vmatprep.subr.bf16.mxu0 %v454_v0  ;;  %v290_v19 = vpack.c.bf16 %v82_v18, %v81_v17  ;;  %v84_v21 = vld [vmem:[#allocation5 + $0x68] sm:$0xff]  ;;  %v85_v23 = vld [vmem:[#allocation5 + $0x70] sm:$0xff]  ;;  %v86_v24 = vld [vmem:[#allocation5 + $0x78] sm:$0xff]  ;;  %p380_p11 = scmp.lt.s32.totalorder %s193_s18, %s193_s18  ;;  %p381_p12 = scmp.lt.s32.totalorder %s375_s23, %s375_s23 }
  0x3d   :  { %v293_v22 = vpack.c.bf16 %v84_v21, %v83_v20  ;;  %v296_v25 = vpack.c.bf16 %v86_v24, %v85_v23  ;;  %v70_v26 = vld [vmem:[#allocation2] sm:$0xff]  ;;  %v68_v27 = vld [vmem:[#allocation7] sm:$0xff] }
  0x3e   :  { %v166_v28 = vsub.f32 1.0, %v68_v27  ;;  %v66_v29 = vld [vmem:[%s583_s3] sm:$0xff]  ;;  %p382_p13 = por %p381_p12, %p380_p11 }
  0x3f   :  { %v219_v30 = vld [vmem:[%s582_s2] ss:$0 sm:$0xff] }
  0x40   :  { %v167_v31 = vmul.f32 %v166_v28, %v66_v29  ;;  %p383_p0 = pnand %p382_p13, %p376_p10 }
  0x43   :  { %279 = vmatpush3.bf16.xpose.msra.mxu0 %v278_v7 }
  0x44   :  { %280 = vmatprep.subr.bf16.mxu0 %v454_v0 }
  0x4b   :  { %282 = vmatpush3.bf16.xpose.msra.mxu0 %v281_v10 }
  0x4c   :  { %283 = vmatprep.subr.bf16.mxu0 %v454_v0 }
  0x53   :  { %285 = vmatpush3.bf16.xpose.msra.mxu0 %v284_v13 }
  0x54   :  { %286 = vmatprep.subr.bf16.mxu0 %v454_v0 }
  0x5b   :  { %288 = vmatpush3.bf16.xpose.msra.mxu0 %v287_v16 }
  0x5c   :  { %289 = vmatprep.subr.bf16.mxu0 %v454_v0 }
  0x63   :  { %291 = vmatpush3.bf16.xpose.msra.mxu0 %v290_v19 }
  0x64   :  { %292 = vmatprep.subr.bf16.mxu0 %v454_v0 }
  0x6b   :  { %294 = vmatpush3.bf16.xpose.msra.mxu0 %v293_v22 }
  0x6c   :  { %295 = vmatprep.subr.bf16.mxu0 %v454_v0 }
  0x73   :  { %297 = vmatpush3.bf16.xpose.msra.mxu0 %v296_v25 }
  0x7a   :  { %272 = vmatmul.mubr.f32.vlgmr.msra.gmra.mrb[0].mxu0 %v70_v26 }
 0x14d   :  { %v160_v32 = vpop.f32.mrb[0].mxu0 }
 0x14e   :  { %v161_v33 = vadd.f32 %v219_v30, %v160_v32  ;;  %v273_v34 = vpop.f32.mrb[1].mxu0 }
 0x150   :  { %v168_v35 = vadd.f32 %v167_v31, %v161_v33 }
 0x152   :  { %174 = vst [vmem:[#allocation9] sm:$0xff] %v168_v35  ;;  %v220_v36 = vadd.f32 -1.0, %v168_v35 }
 0x153   :  { %386 = shalt.err (!%p383_p0)
}
 0x154   :  { %s387_s24 = scalar_lea.hbm %s586_s6, 128 }
 0x155   :  { %p388_p1 = scmp.ne.s32.totalorder %s586_s6, %s387_s24  ;;  %p391_p2 = scmp.lt.u32.totalorder %s387_s24, %s586_s6 }
 0x157   :  { %p393_p3 = pnand %p391_p2, %p388_p1 }
 0x159   :  { %396 = shalt.err (!%p393_p3)
}
 0x15a   :  { %195 = dma.vmem_to_hbm [thread:$0]  %s193_s18, 128, %s586_s6, [#allocation10]   ;;  %vm170_vm1 = vcmp.gt.f32.partialorder %v220_v36, 0.0 }
 0x15b   :  { %v221_v37 = vsel %vm170_vm1, 1.0, %v456_v1  ;;  %s397_s30 = scalar_lea.vmem %s183_s20, 128  ;;  %p402_p5 = scmp.lt.s32.totalorder %s183_s20, %s183_s20 }
 0x15c   :  { %173 = vst [vmem:[#allocation8] sm:$0xff] %v221_v37  ;;  %175 = vst [vmem:[#allocation11] sm:$0xff] %v221_v37  ;;  %p398_p4 = scmp.ne.s32.totalorder %s183_s20, %s397_s30  ;;  %p403_p6 = scmp.lt.s32.totalorder %s397_s30, %s397_s30 }
 0x15e   :  { %p404_p7 = por %p403_p6, %p402_p5 }
 0x160   :  { %p405_p8 = pnand %p404_p7, %p398_p4 }
 0x162   :  { %408 = shalt.err (!%p405_p8)
}
 0x163   :  { %s409_s10 = scalar_lea.hbm %s585_s5, 128 }
 0x164   :  { %p410_p9 = scmp.ne.s32.totalorder %s585_s5, %s409_s10  ;;  %p413_p10 = scmp.lt.u32.totalorder %s409_s10, %s585_s5 }
 0x166   :  { %p415_p11 = pnand %p413_p10, %p410_p9 }
 0x168   :  { %418 = shalt.err (!%p415_p11)
}
 0x169   :  { %185 = dma.vmem_to_hbm [thread:$0]  %s183_s20, 128, %s585_s5, [#allocation4]  }
 0x16a   :  { %s419_s14 = scalar_lea.vmem %s203_s22, 128  ;;  %p424_p13 = scmp.lt.s32.totalorder %s203_s22, %s203_s22 }
 0x16b   :  { %p420_p12 = scmp.ne.s32.totalorder %s203_s22, %s419_s14  ;;  %p425_p0 = scmp.lt.s32.totalorder %s419_s14, %s419_s14 }
 0x16d   :  { %p426_p1 = por %p425_p0, %p424_p13 }
 0x16f   :  { %p427_p2 = pnand %p426_p1, %p420_p12 }
 0x171   :  { %430 = shalt.err (!%p427_p2)
}
 0x172   :  { %s431_s17 = scalar_lea.hbm %s587_s7, 128 }
 0x173   :  { %p432_p3 = scmp.ne.s32.totalorder %s587_s7, %s431_s17  ;;  %p435_p4 = scmp.lt.u32.totalorder %s431_s17, %s587_s7 }
 0x175   :  { %p437_p5 = pnand %p435_p4, %p432_p3 }
 0x177   :  { %440 = shalt.err (!%p437_p5)
}
 0x178   :  { %205 = dma.vmem_to_hbm [thread:$0]  %s203_s22, 128, %s587_s7, [#allocation10]  }
 0x179   :  { %445 = dma.done.wait [#allocation4], 128  }
 0x17a   :  { %446 = vsyncadd [#allocation4], 4294967168 }
 0x17b   :  { %447 = dma.done.wait [#allocation10], 256  }
 0x17c   :  { %448 = vsyncadd [#allocation10], 4294967040 }
 0x17d   :  { %215 = vsyncpa [#allocation3], 1 }
 0x17e   :  { %216 = vsyncpa [#allocation6], 1 }
 0x17f   :  { %217 = vsyncpa [#allocation4], 1 }
 0x180   :  { %218 = vsyncpa [#allocation10], 1 }

</bundles_post_ra>
